<compile_context>
chip_gen: v6e
topology: v6e:2x2x1
jax: 0.10.0
libtpu: 0.0.40
codegen_flags: <defaults>
</compile_context>

<pallas_src>
import functools

import jax
import jax.numpy as jnp
from jax.experimental import pallas as pl
from jax.experimental.pallas import tpu as pltpu


def _round_up(v, m):
    return (v + m - 1) // m * m


def _swish(x):
    return x * jax.nn.sigmoid(x)


def _softplus(x):
    # numerically stable softplus (same as jax.nn.softplus)
    return jnp.logaddexp(x, 0.0)


def packed_ensemble_kernel(x_ref, w_ref, b_ref, out_ref):
    """Whole probabilistic-ensemble MLP in 5 lane-dense matmuls (single grid step).

    x_ref:   (B, P)      member inputs packed along lanes: lanes [e*D_in,(e+1)*D_in)
                         hold member e's input row; pad lanes are zero.
    w_ref:   (5, P, P)   block-diagonal weights (layers 0-2, mean head, logvar head),
                         zero-padded to P so pad lanes contribute exactly 0.
    b_ref:   (7, P)      rows: b0, b1, b2, b_mean, b_logvar, max_logvar, min_logvar
                         (per-member biases lane-packed; bounds tiled per member).
    out_ref: (2, B, P)   row 0: packed means, row 1: packed clamped logvars.
                         Valid lanes [0, E*out_dim); pad lanes are don't-care.
    """
    h = x_ref[...]                                                     # (B, P)

    # Three hidden layers with swish. Block-diagonal weights keep ensemble
    # members independent while filling the MXU / vregs.
    for l in range(3):
        h = jnp.dot(h, w_ref[l], preferred_element_type=jnp.float32) + b_ref[l:l + 1, :]
        h = _swish(h)

    # Final layer split into mean / logvar heads (both lane-origin 0, no
    # unaligned slice needed afterwards).
    mean = jnp.dot(h, w_ref[3], preferred_element_type=jnp.float32) + b_ref[3:4, :]
    logvar = jnp.dot(h, w_ref[4], preferred_element_type=jnp.float32) + b_ref[4:5, :]

    # Soft-clamp logvar between learned bounds (max first, then min) —
    # matches ProbabilisticEnsemble.forward.
    max_lv = b_ref[5:6, :]
    min_lv = b_ref[6:7, :]
    logvar = max_lv - _softplus(max_lv - logvar)
    logvar = min_lv + _softplus(logvar - min_lv)

    # One fused, lane-dense (multiple-of-128) output buffer -> unmasked stores.
    out_ref[0] = mean
    out_ref[1] = logvar


def prepare_params(params):
    """ONE-TIME packing of ensemble parameters (not per forward call).

    Builds block-diagonal weights so the whole ensemble runs as a single
    lane-dense matmul per layer, and stacks every small per-layer vector
    (biases + logvar bounds) into one (7, P) operand.
    Returns (w_packed, b_packed, out_dim).
    """
    w0, w1, w2, w3 = params["w0"], params["w1"], params["w2"], params["w3"]
    b0, b1, b2, b3 = params["b0"], params["b1"], params["b2"], params["b3"]
    max_lv, min_lv = params["max_logvar"], params["min_logvar"]

    E, D_in, H = w0.shape
    out_dim = w3.shape[-1] // 2
    # Packed lane width: covers E*D_in (layer-0 contraction), E*H (hidden) and
    # E*out_dim (heads); rounded to a multiple of 128 for unmasked stores.
    P = _round_up(max(E * D_in, E * H, E * out_dim), 128)

    def block_diag(w):
        # (E, fin, fout) -> (P, P): w[e] at rows [e*fin,(e+1)*fin), cols
        # [e*fout,(e+1)*fout); zeros elsewhere, so pad lanes contribute 0.
        e, fin, fout = w.shape
        eye = jnp.eye(e, dtype=w.dtype)
        bd = jnp.einsum("eio,eg->eigo", w, eye).reshape(e * fin, e * fout)
        return jnp.pad(bd, ((0, P - e * fin), (0, P - e * fout)))

    def pack_vec(b):
        # (E, 1, f) -> (P,): member e's vector at lanes [e*f, (e+1)*f).
        e, _, f = b.shape
        return jnp.pad(b.reshape(e * f), (0, P - e * f))

    def pack_bound(v):
        # Shared logvar bound (1, out_dim) -> tiled per member, padded to P.
        return jnp.pad(jnp.tile(v.reshape(-1), E), (0, P - E * out_dim))

    # Split the final layer into mean / logvar heads here (once), not per call.
    w3m, w3v = w3[:, :, :out_dim], w3[:, :, out_dim:]
    b3m, b3v = b3[:, :, :out_dim], b3[:, :, out_dim:]

    w_packed = jnp.stack(
        [block_diag(w0), block_diag(w1), block_diag(w2),
         block_diag(w3m), block_diag(w3v)], axis=0)                    # (5, P, P)
    b_packed = jnp.stack(
        [pack_vec(b0), pack_vec(b1), pack_vec(b2),
         pack_vec(b3m), pack_vec(b3v),
         pack_bound(max_lv), pack_bound(min_lv)], axis=0)              # (7, P)

    return w_packed, b_packed, out_dim


@functools.partial(jax.jit, static_argnames=("out_dim",))
def dynamics_model_forward(x, w_packed, b_packed, *, out_dim):
    """Forward pass of DynamicsModel (probabilistic ensemble, separate_reward_func=None).

    Args:
      x: (E, B, D_in) float32 inputs (obs || action), expanded per ensemble member.
      w_packed, b_packed: outputs of prepare_params (built once, reused every call).
      out_dim: obs_dim + 1 (reward prediction concatenated in front).
    Returns:
      (mean, logvar), each (E, B, out_dim).
    """
    E, B, D_in = x.shape
    n_w, P, _ = w_packed.shape

    # Lane-pack the member inputs: (E, B, D_in) -> (B, E*D_in), zero-pad to P.
    # Pure layout plumbing; fused on-device under jit.
    x_packed = jnp.pad(
        jnp.transpose(x, (1, 0, 2)).reshape(B, E * D_in),
        ((0, 0), (0, P - E * D_in)))

    out = pl.pallas_call(
        packed_ensemble_kernel,
        out_shape=jax.ShapeDtypeStruct((2, B, P), jnp.float32),
        # Single grid step on all generations (v5e/v6e/v7x): work is tiny, extra
        # steps/cores would only add grid + DMA-descriptor overhead.
        grid=(1,),
        in_specs=[
            pl.BlockSpec((B, P), lambda i: (0, 0)),          # packed activations
            pl.BlockSpec((n_w, P, P), lambda i: (0, 0, 0)),  # all weights, 1 operand
            pl.BlockSpec(b_packed.shape, lambda i: (0, 0)),  # all biases + bounds
        ],
        out_specs=pl.BlockSpec((2, B, P), lambda i: (0, 0, 0)),
        compiler_params=pltpu.CompilerParams(
            dimension_semantics=("arbitrary",)),
    )(x_packed, w_packed, b_packed)

    # Unpack the fused lane-packed slab back to (E, B, out_dim).
    valid = out[:, :, :E * out_dim].reshape(2, B, E, out_dim)
    mean = jnp.transpose(valid[0], (1, 0, 2))
    logvar = jnp.transpose(valid[1], (1, 0, 2))
    # TODO(synk): for MBPO-scale batches add a batch grid axis with batch on the
    # lane axis (weights resident across batch tiles, bf16 matmul inputs); size
    # tiles for v7x's 64 MiB VMEM / 32 MiB scoped default.
    return mean, logvar


def reference_forward(x, params):
    """Pure-JAX reference for correctness checking (matches PyTorch semantics)."""
    def swish(v):
        return v * jax.nn.sigmoid(v)

    h = swish(jnp.einsum("ebi,eio->ebo", x, params["w0"]) + params["b0"])
    h = swish(jnp.einsum("ebi,eio->ebo", h, params["w1"]) + params["b1"])
    h = swish(jnp.einsum("ebi,eio->ebo", h, params["w2"]) + params["b2"])
    out = jnp.einsum("ebi,eio->ebo", h, params["w3"]) + params["b3"]
    out_dim = params["w3"].shape[-1] // 2
    mean, logvar = out[..., :out_dim], out[..., out_dim:]
    max_lv, min_lv = params["max_logvar"], params["min_logvar"]
    logvar = max_lv - jax.nn.softplus(max_lv - logvar)
    logvar = min_lv + jax.nn.softplus(logvar - min_lv)
    return mean, logvar


def init_params(key, ensemble_size, input_dim, hidden_dim, out_dim):
    """Deterministic parameter init (shapes follow rlkit ProbabilisticEnsemble)."""
    keys = jax.random.split(key, 4)
    out2 = 2 * out_dim  # mean + logvar
    scale = lambda fan_in: 1.0 / jnp.sqrt(jnp.float32(fan_in))
    return {
        "w0": jax.random.normal(keys[0], (ensemble_size, input_dim, hidden_dim), jnp.float32) * scale(input_dim),
        "b0": jnp.zeros((ensemble_size, 1, hidden_dim), jnp.float32),
        "w1": jax.random.normal(keys[1], (ensemble_size, hidden_dim, hidden_dim), jnp.float32) * scale(hidden_dim),
        "b1": jnp.zeros((ensemble_size, 1, hidden_dim), jnp.float32),
        "w2": jax.random.normal(keys[2], (ensemble_size, hidden_dim, hidden_dim), jnp.float32) * scale(hidden_dim),
        "b2": jnp.zeros((ensemble_size, 1, hidden_dim), jnp.float32),
        "w3": jax.random.normal(keys[3], (ensemble_size, hidden_dim, out2), jnp.float32) * scale(hidden_dim),
        "b3": jnp.zeros((ensemble_size, 1, out2), jnp.float32),
        # learned logvar bounds (shared across ensemble), rlkit init: +0.5 / -10
        "max_logvar": jnp.full((1, out_dim), 0.5, jnp.float32),
        "min_logvar": jnp.full((1, out_dim), -10.0, jnp.float32),
    }


if __name__ == "__main__":
    # Small shapes consistent with the module: ensemble of MLPs over (obs||action).
    ensemble_size = 4
    batch = 8
    obs_dim = 16
    action_dim = 8
    input_dim = obs_dim + action_dim          # 24
    hidden_dim = 32
    out_dim = obs_dim + 1                     # learn_reward=True -> [reward, next_obs]

    key = jax.random.PRNGKey(0)
    k_x, k_p = jax.random.split(key)
    x = jax.random.normal(k_x, (ensemble_size, batch, input_dim), jnp.float32)
    params = init_params(k_p, ensemble_size, input_dim, hidden_dim, out_dim)

    # One-time parameter preparation (block-diagonal / lane packing).
    w_packed, b_packed, od = prepare_params(params)
    w_packed = jax.block_until_ready(w_packed)
    b_packed = jax.block_until_ready(b_packed)

    mean, logvar = dynamics_model_forward(x, w_packed, b_packed, out_dim=od)
    mean = jax.block_until_ready(mean)
    logvar = jax.block_until_ready(logvar)

    mean_ref, logvar_ref = reference_forward(x, params)
    assert mean.shape == (ensemble_size, batch, out_dim)
    assert logvar.shape == (ensemble_size, batch, out_dim)
    # Kernel and reference both use TPU default matmul precision; block-diagonal
    # zero padding contributes exactly 0, so results track the reference closely.
    # TODO(synk): pass precision=HIGHEST to both if bit-level fp32 parity is needed.
    assert jnp.allclose(mean, mean_ref, atol=2e-4, rtol=2e-4)
    assert jnp.allclose(logvar, logvar_ref, atol=2e-4, rtol=2e-4)

    # TODO(synk): sample()/get_loss()/eval_score()/elite-selection and the
    # separate_reward_func branch are training/inference utilities outside this
    # forward hot path and are not translated.
    print("KERNEL_OK")
</pallas_src>

<mosaic_0001>
module attributes {stable_mosaic.version = 11 : i64} {
  func.func @packed_ensemble_kernel(%arg0: i32, %arg1: memref<8x128xf32, #tpu.memory_space<vmem>>, %arg2: memref<5x128x128xf32, #tpu.memory_space<vmem>>, %arg3: memref<7x128xf32, #tpu.memory_space<vmem>>, %arg4: memref<2x8x128xf32, #tpu.memory_space<vmem>>) attributes {dimension_semantics = [#tpu.dimension_semantics<arbitrary>], iteration_bounds = array<i64: 1>, scalar_prefetch = 0 : i64, scratch_operands = 0 : i64, tpu.core_type = #tpu.core_type<tc>, window_params = [{pipeline_mode = #tpu.pipeline_mode<synchronous>, transform_indices = @transform_0, window_bounds = array<i64: 8, 128>}, {pipeline_mode = #tpu.pipeline_mode<synchronous>, transform_indices = @transform_1, window_bounds = array<i64: 5, 128, 128>}, {pipeline_mode = #tpu.pipeline_mode<synchronous>, transform_indices = @transform_2, window_bounds = array<i64: 7, 128>}, {pipeline_mode = #tpu.pipeline_mode<synchronous>, transform_indices = @transform_3, window_bounds = array<i64: 2, 8, 128>}]} {
    %c0 = arith.constant 0 : index
    %c0_0 = arith.constant 0 : index
    %0 = vector.load %arg1[%c0, %c0_0] : memref<8x128xf32, #tpu.memory_space<vmem>>, vector<8x128xf32>
    %c0_1 = arith.constant 0 : index
    %c0_2 = arith.constant 0 : index
    %c0_3 = arith.constant 0 : index
    %1 = vector.load %arg2[%c0_1, %c0_2, %c0_3] : memref<5x128x128xf32, #tpu.memory_space<vmem>>, vector<1x128x128xf32>
    %2 = vector.shape_cast %1 : vector<1x128x128xf32> to vector<128x128xf32>
    %cst = arith.constant dense<0.000000e+00> : vector<8x128xf32>
    %3 = tpu.matmul %0, %2, %cst {dimension_numbers = #tpu.dot_dimension_numbers<[1], [0], [0], [1], [0, 0, 1, 1], [], []>} : vector<8x128xf32>, vector<128x128xf32>, vector<8x128xf32> -> vector<8x128xf32>
    %c0_4 = arith.constant 0 : index
    %c0_5 = arith.constant 0 : index
    %4 = vector.load %arg3[%c0_4, %c0_5] : memref<7x128xf32, #tpu.memory_space<vmem>>, vector<1x128xf32>
    %5 = vector.broadcast %4 : vector<1x128xf32> to vector<8x128xf32>
    %6 = arith.addf %3, %5 : vector<8x128xf32>
    %7 = arith.negf %6 : vector<8x128xf32>
    %8 = math.exp %7 : vector<8x128xf32>
    %cst_6 = arith.constant 1.000000e+00 : f32
    %9 = vector.broadcast %cst_6 : f32 to vector<8x128xf32>
    %10 = arith.addf %9, %8 : vector<8x128xf32>
    %11 = arith.divf %9, %10 : vector<8x128xf32>
    %12 = arith.mulf %6, %11 : vector<8x128xf32>
    %c1 = arith.constant 1 : index
    %c0_7 = arith.constant 0 : index
    %c0_8 = arith.constant 0 : index
    %13 = vector.load %arg2[%c1, %c0_7, %c0_8] : memref<5x128x128xf32, #tpu.memory_space<vmem>>, vector<1x128x128xf32>
    %14 = vector.shape_cast %13 : vector<1x128x128xf32> to vector<128x128xf32>
    %cst_9 = arith.constant dense<0.000000e+00> : vector<8x128xf32>
    %15 = tpu.matmul %12, %14, %cst_9 {dimension_numbers = #tpu.dot_dimension_numbers<[1], [0], [0], [1], [0, 0, 1, 1], [], []>} : vector<8x128xf32>, vector<128x128xf32>, vector<8x128xf32> -> vector<8x128xf32>
    %c1_10 = arith.constant 1 : index
    %c0_11 = arith.constant 0 : index
    %16 = vector.load %arg3[%c1_10, %c0_11] : memref<7x128xf32, #tpu.memory_space<vmem>>, vector<1x128xf32>
    %17 = vector.broadcast %16 : vector<1x128xf32> to vector<8x128xf32>
    %18 = arith.addf %15, %17 : vector<8x128xf32>
    %19 = arith.negf %18 : vector<8x128xf32>
    %20 = math.exp %19 : vector<8x128xf32>
    %cst_12 = arith.constant 1.000000e+00 : f32
    %21 = vector.broadcast %cst_12 : f32 to vector<8x128xf32>
    %22 = arith.addf %21, %20 : vector<8x128xf32>
    %23 = arith.divf %21, %22 : vector<8x128xf32>
    %24 = arith.mulf %18, %23 : vector<8x128xf32>
    %c2 = arith.constant 2 : index
    %c0_13 = arith.constant 0 : index
    %c0_14 = arith.constant 0 : index
    %25 = vector.load %arg2[%c2, %c0_13, %c0_14] : memref<5x128x128xf32, #tpu.memory_space<vmem>>, vector<1x128x128xf32>
    %26 = vector.shape_cast %25 : vector<1x128x128xf32> to vector<128x128xf32>
    %cst_15 = arith.constant dense<0.000000e+00> : vector<8x128xf32>
    %27 = tpu.matmul %24, %26, %cst_15 {dimension_numbers = #tpu.dot_dimension_numbers<[1], [0], [0], [1], [0, 0, 1, 1], [], []>} : vector<8x128xf32>, vector<128x128xf32>, vector<8x128xf32> -> vector<8x128xf32>
    %c2_16 = arith.constant 2 : index
    %c0_17 = arith.constant 0 : index
    %28 = vector.load %arg3[%c2_16, %c0_17] : memref<7x128xf32, #tpu.memory_space<vmem>>, vector<1x128xf32>
    %29 = vector.broadcast %28 : vector<1x128xf32> to vector<8x128xf32>
    %30 = arith.addf %27, %29 : vector<8x128xf32>
    %31 = arith.negf %30 : vector<8x128xf32>
    %32 = math.exp %31 : vector<8x128xf32>
    %cst_18 = arith.constant 1.000000e+00 : f32
    %33 = vector.broadcast %cst_18 : f32 to vector<8x128xf32>
    %34 = arith.addf %33, %32 : vector<8x128xf32>
    %35 = arith.divf %33, %34 : vector<8x128xf32>
    %36 = arith.mulf %30, %35 : vector<8x128xf32>
    %c3 = arith.constant 3 : index
    %c0_19 = arith.constant 0 : index
    %c0_20 = arith.constant 0 : index
    %37 = vector.load %arg2[%c3, %c0_19, %c0_20] : memref<5x128x128xf32, #tpu.memory_space<vmem>>, vector<1x128x128xf32>
    %38 = vector.shape_cast %37 : vector<1x128x128xf32> to vector<128x128xf32>
    %cst_21 = arith.constant dense<0.000000e+00> : vector<8x128xf32>
    %39 = tpu.matmul %36, %38, %cst_21 {dimension_numbers = #tpu.dot_dimension_numbers<[1], [0], [0], [1], [0, 0, 1, 1], [], []>} : vector<8x128xf32>, vector<128x128xf32>, vector<8x128xf32> -> vector<8x128xf32>
    %c3_22 = arith.constant 3 : index
    %c0_23 = arith.constant 0 : index
    %40 = vector.load %arg3[%c3_22, %c0_23] : memref<7x128xf32, #tpu.memory_space<vmem>>, vector<1x128xf32>
    %41 = vector.broadcast %40 : vector<1x128xf32> to vector<8x128xf32>
    %42 = arith.addf %39, %41 : vector<8x128xf32>
    %c4 = arith.constant 4 : index
    %c0_24 = arith.constant 0 : index
    %c0_25 = arith.constant 0 : index
    %43 = vector.load %arg2[%c4, %c0_24, %c0_25] : memref<5x128x128xf32, #tpu.memory_space<vmem>>, vector<1x128x128xf32>
    %44 = vector.shape_cast %43 : vector<1x128x128xf32> to vector<128x128xf32>
    %cst_26 = arith.constant dense<0.000000e+00> : vector<8x128xf32>
    %45 = tpu.matmul %36, %44, %cst_26 {dimension_numbers = #tpu.dot_dimension_numbers<[1], [0], [0], [1], [0, 0, 1, 1], [], []>} : vector<8x128xf32>, vector<128x128xf32>, vector<8x128xf32> -> vector<8x128xf32>
    %c4_27 = arith.constant 4 : index
    %c0_28 = arith.constant 0 : index
    %46 = vector.load %arg3[%c4_27, %c0_28] : memref<7x128xf32, #tpu.memory_space<vmem>>, vector<1x128xf32>
    %47 = vector.broadcast %46 : vector<1x128xf32> to vector<8x128xf32>
    %48 = arith.addf %45, %47 : vector<8x128xf32>
    %c5 = arith.constant 5 : index
    %c0_29 = arith.constant 0 : index
    %49 = vector.load %arg3[%c5, %c0_29] : memref<7x128xf32, #tpu.memory_space<vmem>>, vector<1x128xf32>
    %c6 = arith.constant 6 : index
    %c0_30 = arith.constant 0 : index
    %50 = vector.load %arg3[%c6, %c0_30] : memref<7x128xf32, #tpu.memory_space<vmem>>, vector<1x128xf32>
    %51 = vector.broadcast %49 : vector<1x128xf32> to vector<8x128xf32>
    %52 = arith.subf %51, %48 : vector<8x128xf32>
    %cst_31 = arith.constant 0.000000e+00 : f32
    %53 = vector.broadcast %cst_31 : f32 to vector<8x128xf32>
    %54 = arith.maximumf %52, %53 : vector<8x128xf32>
    %55 = vector.broadcast %cst_31 : f32 to vector<8x128xf32>
    %56 = arith.subf %52, %55 : vector<8x128xf32>
    %57 = arith.cmpf one, %56, %56 : vector<8x128xf32>
    %58 = vector.broadcast %cst_31 : f32 to vector<8x128xf32>
    %59 = arith.addf %52, %58 : vector<8x128xf32>
    %60 = math.absf %56 : vector<8x128xf32>
    %cst_32 = arith.constant 0.000000e+00 : f32
    %61 = vector.broadcast %cst_32 : f32 to vector<8x128xf32>
    %62 = arith.subf %61, %60 : vector<8x128xf32>
    %63 = math.exp %62 : vector<8x128xf32>
    %64 = math.log1p %63 : vector<8x128xf32>
    %65 = arith.addf %54, %64 : vector<8x128xf32>
    %66 = arith.select %57, %59, %65 : vector<8x128xi1>, vector<8x128xf32>
    %67 = vector.broadcast %49 : vector<1x128xf32> to vector<8x128xf32>
    %68 = arith.subf %67, %66 : vector<8x128xf32>
    %69 = vector.broadcast %50 : vector<1x128xf32> to vector<8x128xf32>
    %70 = arith.subf %68, %69 : vector<8x128xf32>
    %cst_33 = arith.constant 0.000000e+00 : f32
    %71 = vector.broadcast %cst_33 : f32 to vector<8x128xf32>
    %72 = arith.maximumf %70, %71 : vector<8x128xf32>
    %73 = vector.broadcast %cst_33 : f32 to vector<8x128xf32>
    %74 = arith.subf %70, %73 : vector<8x128xf32>
    %75 = arith.cmpf one, %74, %74 : vector<8x128xf32>
    %76 = vector.broadcast %cst_33 : f32 to vector<8x128xf32>
    %77 = arith.addf %70, %76 : vector<8x128xf32>
    %78 = math.absf %74 : vector<8x128xf32>
    %cst_34 = arith.constant 0.000000e+00 : f32
    %79 = vector.broadcast %cst_34 : f32 to vector<8x128xf32>
    %80 = arith.subf %79, %78 : vector<8x128xf32>
    %81 = math.exp %80 : vector<8x128xf32>
    %82 = math.log1p %81 : vector<8x128xf32>
    %83 = arith.addf %72, %82 : vector<8x128xf32>
    %84 = arith.select %75, %77, %83 : vector<8x128xi1>, vector<8x128xf32>
    %85 = vector.broadcast %50 : vector<1x128xf32> to vector<8x128xf32>
    %86 = arith.addf %85, %84 : vector<8x128xf32>
    %c0_35 = arith.constant 0 : index
    %c0_36 = arith.constant 0 : index
    %c0_37 = arith.constant 0 : index
    %87 = vector.load %arg4[%c0_35, %c0_36, %c0_37] : memref<2x8x128xf32, #tpu.memory_space<vmem>>, vector<1x8x128xf32>
    %88 = vector.shape_cast %87 : vector<1x8x128xf32> to vector<8x128xf32>
    %89 = vector.shape_cast %42 : vector<8x128xf32> to vector<1x8x128xf32>
    tpu.vector_store %arg4[%c0_35, %c0_36, %c0_37], %89 {strides = array<i32>} : memref<2x8x128xf32, #tpu.memory_space<vmem>>, vector<1x8x128xf32>,
    %c1_38 = arith.constant 1 : index
    %c0_39 = arith.constant 0 : index
    %c0_40 = arith.constant 0 : index
    %90 = vector.load %arg4[%c1_38, %c0_39, %c0_40] : memref<2x8x128xf32, #tpu.memory_space<vmem>>, vector<1x8x128xf32>
    %91 = vector.shape_cast %90 : vector<1x8x128xf32> to vector<8x128xf32>
    %92 = vector.shape_cast %86 : vector<8x128xf32> to vector<1x8x128xf32>
    tpu.vector_store %arg4[%c1_38, %c0_39, %c0_40], %92 {strides = array<i32>} : memref<2x8x128xf32, #tpu.memory_space<vmem>>, vector<1x8x128xf32>,
    return
  }
  func.func @transform_0(%arg0: i32) -> (i32, i32) {
    %c0_i32 = arith.constant 0 : i32
    %c0_i32_0 = arith.constant 0 : i32
    %c0_i32_1 = arith.constant 0 : i32
    return %c0_i32, %c0_i32_0 : i32, i32
  }
  func.func @transform_1(%arg0: i32) -> (i32, i32, i32) {
    %c0_i32 = arith.constant 0 : i32
    %c0_i32_0 = arith.constant 0 : i32
    %c0_i32_1 = arith.constant 0 : i32
    %c0_i32_2 = arith.constant 0 : i32
    return %c0_i32, %c0_i32_0, %c0_i32_1 : i32, i32, i32
  }
  func.func @transform_2(%arg0: i32) -> (i32, i32) {
    %c0_i32 = arith.constant 0 : i32
    %c0_i32_0 = arith.constant 0 : i32
    %c0_i32_1 = arith.constant 0 : i32
    return %c0_i32, %c0_i32_0 : i32, i32
  }
  func.func @transform_3(%arg0: i32) -> (i32, i32, i32) {
    %c0_i32 = arith.constant 0 : i32
    %c0_i32_0 = arith.constant 0 : i32
    %c0_i32_1 = arith.constant 0 : i32
    %c0_i32_2 = arith.constant 0 : i32
    return %c0_i32, %c0_i32_0, %c0_i32_1 : i32, i32, i32
  }
}

</mosaic_0001>

<bundles_post_ra>
// kernel: squeeze.2
= control target key start
LH: loop header
LB: loop body
LE: loop exit
PB: predicated region body
PF: predicated region fallthrough
CT: control target
= control target key end

     0   :  { %vm3_vm0 = vcmask 138240   ;;  %s103_s8 = smov 77   ;;  %s104_s9 = smov 94   ;;  %s150_s0 = inlined_call_operand.vmem [shape: f32[1,8,68], index: 0, kind: input, shape index: {}]   ;;  %s151_s1 = inlined_call_operand.vmem [shape: f32[8,4,17], index: 1, kind: output, shape index: {}]  }
   0x1   :  { %v6_v0 = vld [vmem:[%s150_s0] sm:$0xff]   ;;  %s102_s0 = smov 111  }
   0x2   :  { %7 = vrot.lane.b32.xlu0 %v6_v0, %s102_s0  ;;  %23 = vrot.lane.b32.xlu1 %v6_v0, %s103_s8  ;;  %5 = vst.msk [vmem:[#allocation0] ss:$8 sm:$0xf0] %vm3_vm0, %v6_v0   ;;  %4 = vst.msk [vmem:[#allocation0] ss:$8 sm:$0xf] %vm3_vm0, %v6_v0  }
   0x6   :  { %15 = vrot.lane.b32.xlu0 %v6_v0, %s104_s9 }
  0x74   :  { %v8_v1 = vpop.permute.xlu0 %7   ;;  %v24_v2 = vpop.permute.xlu1 %23  }
  0x75   :  { %11 = vst.msk [vmem:[#allocation0 + $0x1] ss:$8 sm:$0xf] %vm3_vm0, %v8_v1   ;;  %13 = vst.msk [vmem:[#allocation0 + $0x1] ss:$8 sm:$0xf0] %vm3_vm0, %v8_v1  }
  0x76   :  { %27 = vst.msk [vmem:[#allocation0 + $0x3] ss:$8 sm:$0xf] %vm3_vm0, %v24_v2   ;;  %29 = vst.msk [vmem:[#allocation0 + $0x3] ss:$8 sm:$0xf0] %vm3_vm0, %v24_v2  }
  0x78   :  { %v16_v3 = vpop.permute.xlu0 %15  }
  0x79   :  { %19 = vst.msk [vmem:[#allocation0 + $0x2] ss:$8 sm:$0xf] %vm3_vm0, %v16_v3   ;;  %21 = vst.msk [vmem:[#allocation0 + $0x2] ss:$8 sm:$0xf0] %vm3_vm0, %v16_v3  }
  0x80   :  { %v34_v4 = vld [vmem:[#allocation0] sm:$0xf]  ;;  %v39_v5 = vld [vmem:[#allocation0 + $0x8] sm:$0xf]  ;;  %v45_v6 = vld [vmem:[#allocation0 + $0x10] sm:$0xf] }
  0x81   :  { %37 = vst [vmem:[%s151_s1] sm:$0xf] %v34_v4  ;;  %92 = vst [vmem:[%s151_s1 + $0x4] sm:$0xf] %v39_v5  ;;  %v52_v7 = vld [vmem:[#allocation0 + $0x18] sm:$0xf] }
  0x82   :  { %93 = vst [vmem:[%s151_s1 + $0x8] sm:$0xf] %v45_v6  ;;  %v59_v8 = vld [vmem:[#allocation0 + $0x20] sm:$0xf]  ;;  %v66_v9 = vld [vmem:[#allocation0 + $0x28] sm:$0xf] }
  0x83   :  { %94 = vst [vmem:[%s151_s1 + $0xc] sm:$0xf] %v52_v7  ;;  %95 = vst [vmem:[%s151_s1 + $0x10] sm:$0xf] %v59_v8  ;;  %v73_v10 = vld [vmem:[#allocation0 + $0x30] sm:$0xf] }
  0x84   :  { %96 = vst [vmem:[%s151_s1 + $0x14] sm:$0xf] %v66_v9  ;;  %v80_v11 = vld [vmem:[#allocation0 + $0x38] sm:$0xf]  ;;  %97 = vst [vmem:[%s151_s1 + $0x18] sm:$0xf] %v73_v10 }
  0x85   :  { %98 = vst [vmem:[%s151_s1 + $0x1c] sm:$0xf] %v80_v11 }

// kernel: dynamics_model_forward.1
= control target key start
LH: loop header
LB: loop body
LE: loop exit
PB: predicated region body
PF: predicated region fallthrough
CT: control target
= control target key end

     0   :  { %8 = vsyncpa [#allocation3], 0  ;;  %s885_s12 = smov [#allocation2]   ;;  %s1033_s0 = inlined_call_operand.vmem [shape: f32[8,128], index: 0, kind: input, shape index: {}]   ;;  %s1034_s1 = inlined_call_operand.hbm [shape: f32[5,128,128], index: 1, kind: input, shape index: {}]   ;;  %s1035_s2 = inlined_call_operand.vmem [shape: f32[7,128], index: 2, kind: input, shape index: {}]   ;;  %s1036_s3 = inlined_call_operand.vmem [shape: f32[2,8,128], index: 3, kind: output, shape index: {}]  }
   0x1   :  { %s16_s13 = sshll.u32 %s885_s12, 4  ;;  %s17_s13 = int_to_ptr.vmem [resolvable:$true] %s16_s13 }
   0x2   :  { %s871_s14 = scalar_lea.vmem %s17_s13, 10240  ;;  %p876_p1 = scmp.lt.s32.totalorder %s17_s13, %s17_s13 }
   0x3   :  { %p872_p0 = scmp.ne.s32.totalorder %s17_s13, %s871_s14  ;;  %p877_p2 = scmp.lt.s32.totalorder %s871_s14, %s871_s14 }
   0x5   :  { %p878_p3 = por %p877_p2, %p876_p1 }
   0x7   :  { %p879_p4 = pnand %p878_p3, %p872_p0 }
   0x9   :  { %882 = shalt.err (!%p879_p4)
}
   0xa   :  { %s886_s15 = smov 128   ;;  %s887_s16 = smov 8  }
   0xb   :  { %22 = dma.hbm_to_vmem [thread:$0]  %s1034_s1, 10240, %s17_s13, [#allocation3], %s886_s15, %s886_s15, %s887_s16  }
   0xc   :  { %883 = dma.done.wait [#allocation3], 10240  }
   0xd   :  { %884 = vsyncadd [#allocation3], 4294957056  ;;  %v888_v0 = vmov 0.0   ;;  %vm889_vm0 = vmmov 0   ;;  %v44_v1 = vld [vmem:[#allocation2 + $0x78] sm:$0xff]  ;;  %v43_v2 = vld [vmem:[#allocation2 + $0x70] sm:$0xff] }
   0xe   :  { %663 = vmatprep.subr.mxu0 %v888_v0  ;;  %695 = vmatprep.mubr.msk.f32.mxu0 %vm889_vm0, %v888_v0  ;;  %v42_v3 = vld [vmem:[#allocation2 + $0x68] sm:$0xff]  ;;  %v41_v4 = vld [vmem:[#allocation2 + $0x60] sm:$0xff]  ;;  %v40_v5 = vld [vmem:[#allocation2 + $0x58] sm:$0xff] }
   0xf   :  { %698 = vmatprep.subr.mxu1 %v888_v0  ;;  %730 = vmatprep.mubr.msk.f32.mxu1 %vm889_vm0, %v888_v0  ;;  %v39_v6 = vld [vmem:[#allocation2 + $0x50] sm:$0xff]  ;;  %v38_v7 = vld [vmem:[#allocation2 + $0x48] sm:$0xff]  ;;  %v37_v8 = vld [vmem:[#allocation2 + $0x40] sm:$0xff] }
  0x10   :  { %664 = vmatpush3.msra.mxu0 %v44_v1  ;;  %v36_v9 = vld [vmem:[#allocation2 + $0x38] sm:$0xff]  ;;  %v35_v10 = vld [vmem:[#allocation2 + $0x30] sm:$0xff]  ;;  %v34_v11 = vld [vmem:[#allocation2 + $0x28] sm:$0xff] }
  0x11   :  { %665 = vmatprep.subr.mxu0 %v888_v0  ;;  %v33_v12 = vld [vmem:[#allocation2 + $0x20] sm:$0xff]  ;;  %v32_v13 = vld [vmem:[#allocation2 + $0x18] sm:$0xff]  ;;  %v31_v14 = vld [vmem:[#allocation2 + $0x10] sm:$0xff] }
  0x12   :  { %666 = vmatpush3.msra.mxu0 %v43_v2  ;;  %v30_v15 = vld [vmem:[#allocation2 + $0x8] sm:$0xff]  ;;  %v29_v16 = vld [vmem:[#allocation2] sm:$0xff]  ;;  %v143_v18 = vld [vmem:[#allocation2 + $0xf8] sm:$0xff] }
  0x13   :  { %667 = vmatprep.subr.mxu0 %v888_v0  ;;  %v28_v17 = vld [vmem:[%s1033_s0] sm:$0xff]  ;;  %699 = vmatpush3.msra.mxu1 %v143_v18  ;;  %v142_v19 = vld [vmem:[#allocation2 + $0xf0] sm:$0xff]  ;;  %v141_v20 = vld [vmem:[#allocation2 + $0xe8] sm:$0xff] }
  0x14   :  { %668 = vmatpush3.msra.mxu0 %v42_v3  ;;  %700 = vmatprep.subr.mxu1 %v888_v0  ;;  %v140_v21 = vld [vmem:[#allocation2 + $0xe0] sm:$0xff]  ;;  %v139_v22 = vld [vmem:[#allocation2 + $0xd8] sm:$0xff]  ;;  %v138_v23 = vld [vmem:[#allocation2 + $0xd0] sm:$0xff] }
  0x15   :  { %669 = vmatprep.subr.mxu0 %v888_v0  ;;  %701 = vmatpush3.msra.mxu1 %v142_v19  ;;  %v137_v24 = vld [vmem:[#allocation2 + $0xc8] sm:$0xff]  ;;  %v136_v25 = vld [vmem:[#allocation2 + $0xc0] sm:$0xff]  ;;  %v135_v26 = vld [vmem:[#allocation2 + $0xb8] sm:$0xff] }
  0x16   :  { %670 = vmatpush3.msra.mxu0 %v41_v4  ;;  %702 = vmatprep.subr.mxu1 %v888_v0  ;;  %v134_v27 = vld [vmem:[#allocation2 + $0xb0] sm:$0xff]  ;;  %v133_v28 = vld [vmem:[#allocation2 + $0xa8] sm:$0xff]  ;;  %v132_v29 = vld [vmem:[#allocation2 + $0xa0] sm:$0xff] }
  0x17   :  { %671 = vmatprep.subr.mxu0 %v888_v0  ;;  %703 = vmatpush3.msra.mxu1 %v141_v20  ;;  %v131_v30 = vld [vmem:[#allocation2 + $0x98] sm:$0xff]  ;;  %v130_v31 = vld [vmem:[#allocation2 + $0x90] sm:$0xff]  ;;  %v129_v32 = vld [vmem:[#allocation2 + $0x88] sm:$0xff] }
  0x18   :  { %672 = vmatpush3.msra.mxu0 %v40_v5  ;;  %704 = vmatprep.subr.mxu1 %v888_v0  ;;  %v128_v33 = vld [vmem:[#allocation2 + $0x80] sm:$0xff]  ;;  %v242_v43 = vld [vmem:[#allocation2 + $0x178] sm:$0xff]  ;;  %v241_v44 = vld [vmem:[#allocation2 + $0x170] sm:$0xff] }
  0x19   :  { %673 = vmatprep.subr.mxu0 %v888_v0  ;;  %705 = vmatpush3.msra.mxu1 %v140_v21  ;;  %v567_v34 = vld [vmem:[%s1035_s2] ss:$0 sm:$0xff]  ;;  %v240_v45 = vld [vmem:[#allocation2 + $0x168] sm:$0xff]  ;;  %v238_v47 = vld [vmem:[#allocation2 + $0x158] sm:$0xff] }
  0x1a   :  { %674 = vmatpush3.msra.mxu0 %v39_v6  ;;  %706 = vmatprep.subr.mxu1 %v888_v0  ;;  %v239_v46 = vld [vmem:[#allocation2 + $0x160] sm:$0xff]  ;;  %v237_v48 = vld [vmem:[#allocation2 + $0x150] sm:$0xff]  ;;  %v236_v49 = vld [vmem:[#allocation2 + $0x148] sm:$0xff] }
  0x1b   :  { %675 = vmatprep.subr.mxu0 %v888_v0  ;;  %707 = vmatpush3.msra.mxu1 %v139_v22  ;;  %v235_v50 = vld [vmem:[#allocation2 + $0x140] sm:$0xff]  ;;  %v234_v51 = vld [vmem:[#allocation2 + $0x138] sm:$0xff]  ;;  %v233_v52 = vld [vmem:[#allocation2 + $0x130] sm:$0xff] }
  0x1c   :  { %676 = vmatpush3.msra.mxu0 %v38_v7  ;;  %708 = vmatprep.subr.mxu1 %v888_v0  ;;  %v232_v53 = vld [vmem:[#allocation2 + $0x128] sm:$0xff]  ;;  %v231_v54 = vld [vmem:[#allocation2 + $0x120] sm:$0xff]  ;;  %v230_v55 = vld [vmem:[#allocation2 + $0x118] sm:$0xff] }
  0x1d   :  { %677 = vmatprep.subr.mxu0 %v888_v0  ;;  %709 = vmatpush3.msra.mxu1 %v138_v23  ;;  %v229_v56 = vld [vmem:[#allocation2 + $0x110] sm:$0xff]  ;;  %v228_v57 = vld [vmem:[#allocation2 + $0x108] sm:$0xff]  ;;  %v227_v58 = vld [vmem:[#allocation2 + $0x100] sm:$0xff] }
  0x1e   :  { %678 = vmatpush3.msra.mxu0 %v37_v8  ;;  %710 = vmatprep.subr.mxu1 %v888_v0  ;;  %v569_v59 = vld [vmem:[%s1035_s2 + $0x1] ss:$0 sm:$0xff]  ;;  %v341_v5 = vld [vmem:[#allocation2 + $0x1f8] sm:$0xff]  ;;  %v340_v7 = vld [vmem:[#allocation2 + $0x1f0] sm:$0xff] }
  0x1f   :  { %679 = vmatprep.subr.mxu0 %v888_v0  ;;  %711 = vmatpush3.msra.mxu1 %v137_v24  ;;  %v433_v6 = vld [vmem:[#allocation2 + $0x278] sm:$0xff]  ;;  %v432_v8 = vld [vmem:[#allocation2 + $0x270] sm:$0xff]  ;;  %v427_v18 = vld [vmem:[#allocation2 + $0x248] sm:$0xff] }
  0x20   :  { %680 = vmatpush3.msra.mxu0 %v36_v9  ;;  %712 = vmatprep.subr.mxu1 %v888_v0  ;;  %v339_v9 = vld [vmem:[#allocation2 + $0x1e8] sm:$0xff]  ;;  %v334_v19 = vld [vmem:[#allocation2 + $0x1c0] sm:$0xff]  ;;  %v333_v21 = vld [vmem:[#allocation2 + $0x1b8] sm:$0xff] }
  0x21   :  { %681 = vmatprep.subr.mxu0 %v888_v0  ;;  %713 = vmatpush3.msra.mxu1 %v136_v25  ;;  %v426_v20 = vld [vmem:[#allocation2 + $0x240] sm:$0xff]  ;;  %v425_v22 = vld [vmem:[#allocation2 + $0x238] sm:$0xff]  ;;  %v332_v23 = vld [vmem:[#allocation2 + $0x1b0] sm:$0xff] }
  0x22   :  { %682 = vmatpush3.msra.mxu0 %v35_v10  ;;  %714 = vmatprep.subr.mxu1 %v888_v0  ;;  %v431_v10 = vld [vmem:[#allocation2 + $0x268] sm:$0xff]  ;;  %v424_v24 = vld [vmem:[#allocation2 + $0x230] sm:$0xff] }
  0x23   :  { %683 = vmatprep.subr.mxu0 %v888_v0  ;;  %715 = vmatpush3.msra.mxu1 %v135_v26  ;;  %v331_v25 = vld [vmem:[#allocation2 + $0x1a8] sm:$0xff] }
  0x24   :  { %684 = vmatpush3.msra.mxu0 %v34_v11  ;;  %716 = vmatprep.subr.mxu1 %v888_v0  ;;  %v338_v11 = vld [vmem:[#allocation2 + $0x1e0] sm:$0xff]  ;;  %v423_v26 = vld [vmem:[#allocation2 + $0x228] sm:$0xff] }
  0x25   :  { %685 = vmatprep.subr.mxu0 %v888_v0  ;;  %717 = vmatpush3.msra.mxu1 %v134_v27  ;;  %v330_v27 = vld [vmem:[#allocation2 + $0x1a0] sm:$0xff] }
  0x26   :  { %686 = vmatpush3.msra.mxu0 %v33_v12  ;;  %718 = vmatprep.subr.mxu1 %v888_v0  ;;  %v430_v12 = vld [vmem:[#allocation2 + $0x260] sm:$0xff] }
  0x27   :  { %687 = vmatprep.subr.mxu0 %v888_v0  ;;  %719 = vmatpush3.msra.mxu1 %v133_v28  ;;  %v422_v28 = vld [vmem:[#allocation2 + $0x220] sm:$0xff] }
  0x28   :  { %688 = vmatpush3.msra.mxu0 %v32_v13  ;;  %720 = vmatprep.subr.mxu1 %v888_v0  ;;  %v337_v13 = vld [vmem:[#allocation2 + $0x1d8] sm:$0xff] }
  0x29   :  { %689 = vmatprep.subr.mxu0 %v888_v0  ;;  %721 = vmatpush3.msra.mxu1 %v132_v29  ;;  %v329_v29 = vld [vmem:[#allocation2 + $0x198] sm:$0xff] }
  0x2a   :  { %690 = vmatpush3.msra.mxu0 %v31_v14  ;;  %722 = vmatprep.subr.mxu1 %v888_v0  ;;  %v429_v14 = vld [vmem:[#allocation2 + $0x258] sm:$0xff] }
  0x2b   :  { %691 = vmatprep.subr.mxu0 %v888_v0  ;;  %723 = vmatpush3.msra.mxu1 %v131_v30  ;;  %v421_v30 = vld [vmem:[#allocation2 + $0x218] sm:$0xff] }
  0x2c   :  { %692 = vmatpush3.msra.mxu0 %v30_v15  ;;  %724 = vmatprep.subr.mxu1 %v888_v0  ;;  %v336_v15 = vld [vmem:[#allocation2 + $0x1d0] sm:$0xff] }
  0x2d   :  { %693 = vmatprep.subr.mxu0 %v888_v0  ;;  %725 = vmatpush3.msra.mxu1 %v130_v31  ;;  %v328_v31 = vld [vmem:[#allocation2 + $0x190] sm:$0xff] }
  0x2e   :  { %694 = vmatpush3.msra.mxu0 %v29_v16  ;;  %726 = vmatprep.subr.mxu1 %v888_v0  ;;  %v428_v16 = vld [vmem:[#allocation2 + $0x250] sm:$0xff] }
  0x2f   :  { %696 = vmatmul.mubr.f32.vlgmr.msra.gmra.mxu0 %v28_v17  ;;  %733 = vmatprep.subr.mxu0 %v888_v0  ;;  %v335_v17 = vld [vmem:[#allocation2 + $0x1c8] sm:$0xff] }
  0x30   :  { %765 = vmatprep.mubr.msk.f32.mxu0 %vm889_vm0, %v888_v0  ;;  %727 = vmatpush3.msra.mxu1 %v129_v32  ;;  %v420_v32 = vld [vmem:[#allocation2 + $0x210] sm:$0xff] }
  0x31   :  { %728 = vmatprep.subr.mxu1 %v888_v0  ;;  %734 = vmatpush3.msra.mxu0 %v242_v43 }
  0x32   :  { %729 = vmatpush3.msra.mxu1 %v128_v33  ;;  %735 = vmatprep.subr.mxu0 %v888_v0  ;;  %v327_v33 = vld [vmem:[#allocation2 + $0x188] sm:$0xff] }
  0x33   :  { %768 = vmatprep.subr.mxu1 %v888_v0  ;;  %736 = vmatpush3.msra.mxu0 %v241_v44 }
  0x34   :  { %737 = vmatprep.subr.mxu0 %v888_v0 }
  0x35   :  { %738 = vmatpush3.msra.mxu0 %v240_v45 }
  0x36   :  { %739 = vmatprep.subr.mxu0 %v888_v0 }
  0x37   :  { %740 = vmatpush3.msra.mxu0 %v239_v46  ;;  %v574_v46 = vld [vmem:[%s1035_s2 + $0x4] ss:$0 sm:$0xff] }
  0x38   :  { %741 = vmatprep.subr.mxu0 %v888_v0 }
  0x39   :  { %742 = vmatpush3.msra.mxu0 %v238_v47 }
  0x3a   :  { %743 = vmatprep.subr.mxu0 %v888_v0 }
  0x3b   :  { %744 = vmatpush3.msra.mxu0 %v237_v48 }
  0x3c   :  { %745 = vmatprep.subr.mxu0 %v888_v0 }
  0x3d   :  { %746 = vmatpush3.msra.mxu0 %v236_v49  ;;  %v575_v49 = vld [vmem:[%s1035_s2 + $0x5] ss:$0 sm:$0xff] }
  0x3e   :  { %747 = vmatprep.subr.mxu0 %v888_v0 }
  0x3f   :  { %748 = vmatpush3.msra.mxu0 %v235_v50 }
  0x40   :  { %749 = vmatprep.subr.mxu0 %v888_v0 }
  0x41   :  { %750 = vmatpush3.msra.mxu0 %v234_v51 }
  0x42   :  { %751 = vmatprep.subr.mxu0 %v888_v0 }
  0x43   :  { %752 = vmatpush3.msra.mxu0 %v233_v52 }
  0x44   :  { %753 = vmatprep.subr.mxu0 %v888_v0 }
  0x45   :  { %754 = vmatpush3.msra.mxu0 %v232_v53 }
  0x46   :  { %755 = vmatprep.subr.mxu0 %v888_v0 }
  0x47   :  { %756 = vmatpush3.msra.mxu0 %v231_v54 }
  0x48   :  { %757 = vmatprep.subr.mxu0 %v888_v0 }
  0x49   :  { %758 = vmatpush3.msra.mxu0 %v230_v55 }
  0x4a   :  { %759 = vmatprep.subr.mxu0 %v888_v0 }
  0x4b   :  { %760 = vmatpush3.msra.mxu0 %v229_v56 }
  0x4c   :  { %761 = vmatprep.subr.mxu0 %v888_v0 }
  0x4d   :  { %762 = vmatpush3.msra.mxu0 %v228_v57 }
  0x4e   :  { %763 = vmatprep.subr.mxu0 %v888_v0 }
  0x4f   :  { %764 = vmatpush3.msra.mxu0 %v227_v58 }
  0x50   :  { %803 = vmatprep.subr.mxu0 %v888_v0 }
  0xef   :  { %v116_v35 = vpop.f32.mrf.mxu0 }
  0xf0   :  { %v117_v36 = vadd.f32 %v567_v34, %v116_v35  ;;  %v419_v34 = vld [vmem:[#allocation2 + $0x208] sm:$0xff]  ;;  %v326_v35 = vld [vmem:[#allocation2 + $0x180] sm:$0xff] }
  0xf1   :  { %v697_v37 = vpop.f32.mrf.mxu0 }
  0xf2   :  { %v568_v38 = vmul.f32 -1.442695, %v117_v36  ;;  %v571_v37 = vld [vmem:[%s1035_s2 + $0x2] ss:$0 sm:$0xff] }
  0xf4   :  { %843 = vpow2.f32 %v568_v38 }
 0x101   :  { %v844_v39 = vpop.eup %843 }
 0x102   :  { %v123_v40 = vadd.f32 1.0, %v844_v39 }
 0x104   :  { %845 = vrcp.f32 %v123_v40 }
 0x111   :  { %v846_v41 = vpop.eup %845 }
 0x112   :  { %v126_v42 = vmul.f32 %v846_v41, %v117_v36  ;;  %v418_v36 = vld [vmem:[#allocation2 + $0x200] sm:$0xff] }
 0x114   :  { %731 = vmatmul.mubr.f32.vlgmr.msra.gmra.mxu1 %v126_v42 }
 0x115   :  { %800 = vmatprep.mubr.msk.f32.mxu1 %vm889_vm0, %v888_v0  ;;  %769 = vmatpush3.msra.mxu1 %v341_v5 }
 0x116   :  { %770 = vmatprep.subr.mxu1 %v888_v0 }
 0x117   :  { %771 = vmatpush3.msra.mxu1 %v340_v7 }
 0x118   :  { %772 = vmatprep.subr.mxu1 %v888_v0 }
 0x119   :  { %773 = vmatpush3.msra.mxu1 %v339_v9 }
 0x11a   :  { %774 = vmatprep.subr.mxu1 %v888_v0 }
 0x11b   :  { %775 = vmatpush3.msra.mxu1 %v338_v11 }
 0x11c   :  { %776 = vmatprep.subr.mxu1 %v888_v0 }
 0x11d   :  { %777 = vmatpush3.msra.mxu1 %v337_v13 }
 0x11e   :  { %778 = vmatprep.subr.mxu1 %v888_v0 }
 0x11f   :  { %779 = vmatpush3.msra.mxu1 %v336_v15 }
 0x120   :  { %780 = vmatprep.subr.mxu1 %v888_v0 }
 0x121   :  { %781 = vmatpush3.msra.mxu1 %v335_v17 }
 0x122   :  { %782 = vmatprep.subr.mxu1 %v888_v0 }
 0x123   :  { %783 = vmatpush3.msra.mxu1 %v334_v19 }
 0x124   :  { %784 = vmatprep.subr.mxu1 %v888_v0 }
 0x125   :  { %785 = vmatpush3.msra.mxu1 %v333_v21 }
 0x126   :  { %786 = vmatprep.subr.mxu1 %v888_v0 }
 0x127   :  { %787 = vmatpush3.msra.mxu1 %v332_v23 }
 0x128   :  { %788 = vmatprep.subr.mxu1 %v888_v0 }
 0x129   :  { %789 = vmatpush3.msra.mxu1 %v331_v25 }
 0x12a   :  { %790 = vmatprep.subr.mxu1 %v888_v0 }
 0x12b   :  { %791 = vmatpush3.msra.mxu1 %v330_v27 }
 0x12c   :  { %792 = vmatprep.subr.mxu1 %v888_v0 }
 0x12d   :  { %793 = vmatpush3.msra.mxu1 %v329_v29 }
 0x12e   :  { %794 = vmatprep.subr.mxu1 %v888_v0 }
 0x12f   :  { %795 = vmatpush3.msra.mxu1 %v328_v31 }
 0x130   :  { %796 = vmatprep.subr.mxu1 %v888_v0 }
 0x131   :  { %797 = vmatpush3.msra.mxu1 %v327_v33 }
 0x132   :  { %798 = vmatprep.subr.mxu1 %v888_v0 }
 0x133   :  { %799 = vmatpush3.msra.mxu1 %v326_v35 }
 0x1d4   :  { %v215_v60 = vpop.f32.mrf.mxu1 }
 0x1d5   :  { %v216_v61 = vadd.f32 %v569_v59, %v215_v60 }
 0x1d6   :  { %v732_v62 = vpop.f32.mrf.mxu1 }
 0x1d7   :  { %v570_v63 = vmul.f32 -1.442695, %v216_v61 }
 0x1d9   :  { %847 = vpow2.f32 %v570_v63 }
 0x1e6   :  { %v848_v1 = vpop.eup %847 }
 0x1e7   :  { %v222_v2 = vadd.f32 1.0, %v848_v1 }
 0x1e9   :  { %849 = vrcp.f32 %v222_v2 }
 0x1f6   :  { %v850_v3 = vpop.eup %849 }
 0x1f7   :  { %v225_v4 = vmul.f32 %v850_v3, %v216_v61 }
 0x1f9   :  { %766 = vmatmul.mubr.f32.vlgmr.msra.gmra.mxu0 %v225_v4 }
 0x1fa   :  { %835 = vmatprep.mubr.msk.f32.mxu0 %vm889_vm0, %v888_v0  ;;  %804 = vmatpush3.msra.mxu0 %v433_v6  ;;  %v576_v6 = vld [vmem:[%s1035_s2 + $0x6] ss:$0 sm:$0xff] }
 0x1fb   :  { %805 = vmatprep.subr.mxu0 %v888_v0 }
 0x1fc   :  { %806 = vmatpush3.msra.mxu0 %v432_v8 }
 0x1fd   :  { %807 = vmatprep.subr.mxu0 %v888_v0 }
 0x1fe   :  { %808 = vmatpush3.msra.mxu0 %v431_v10 }
 0x1ff   :  { %809 = vmatprep.subr.mxu0 %v888_v0 }
 0x200   :  { %810 = vmatpush3.msra.mxu0 %v430_v12 }
 0x201   :  { %811 = vmatprep.subr.mxu0 %v888_v0 }
 0x202   :  { %812 = vmatpush3.msra.mxu0 %v429_v14 }
 0x203   :  { %813 = vmatprep.subr.mxu0 %v888_v0 }
 0x204   :  { %814 = vmatpush3.msra.mxu0 %v428_v16 }
 0x205   :  { %815 = vmatprep.subr.mxu0 %v888_v0 }
 0x206   :  { %816 = vmatpush3.msra.mxu0 %v427_v18 }
 0x207   :  { %817 = vmatprep.subr.mxu0 %v888_v0 }
 0x208   :  { %818 = vmatpush3.msra.mxu0 %v426_v20 }
 0x209   :  { %819 = vmatprep.subr.mxu0 %v888_v0 }
 0x20a   :  { %820 = vmatpush3.msra.mxu0 %v425_v22 }
 0x20b   :  { %821 = vmatprep.subr.mxu0 %v888_v0 }
 0x20c   :  { %822 = vmatpush3.msra.mxu0 %v424_v24 }
 0x20d   :  { %823 = vmatprep.subr.mxu0 %v888_v0 }
 0x20e   :  { %824 = vmatpush3.msra.mxu0 %v423_v26 }
 0x20f   :  { %825 = vmatprep.subr.mxu0 %v888_v0 }
 0x210   :  { %826 = vmatpush3.msra.mxu0 %v422_v28 }
 0x211   :  { %827 = vmatprep.subr.mxu0 %v888_v0 }
 0x212   :  { %828 = vmatpush3.msra.mxu0 %v421_v30 }
 0x213   :  { %829 = vmatprep.subr.mxu0 %v888_v0 }
 0x214   :  { %830 = vmatpush3.msra.mxu0 %v420_v32 }
 0x215   :  { %831 = vmatprep.subr.mxu0 %v888_v0 }
 0x216   :  { %832 = vmatpush3.msra.mxu0 %v419_v34 }
 0x217   :  { %833 = vmatprep.subr.mxu0 %v888_v0  ;;  %v573_v0 = vld [vmem:[%s1035_s2 + $0x3] ss:$0 sm:$0xff] }
 0x218   :  { %834 = vmatpush3.msra.mxu0 %v418_v36 }
 0x2b9   :  { %v314_v38 = vpop.f32.mrf.mxu0 }
 0x2ba   :  { %v315_v39 = vadd.f32 %v571_v37, %v314_v38 }
 0x2bb   :  { %v767_v40 = vpop.f32.mrf.mxu0 }
 0x2bc   :  { %v572_v41 = vmul.f32 -1.442695, %v315_v39 }
 0x2be   :  { %851 = vpow2.f32 %v572_v41 }
 0x2cb   :  { %v852_v42 = vpop.eup %851 }
 0x2cc   :  { %v321_v43 = vadd.f32 1.0, %v852_v42 }
 0x2ce   :  { %853 = vrcp.f32 %v321_v43 }
 0x2db   :  { %v854_v44 = vpop.eup %853 }
 0x2dc   :  { %v324_v45 = vmul.f32 %v854_v44, %v315_v39 }
 0x2de   :  { %801 = vmatmul.mubr.f32.vlgmr.msra.gmra.mxu1 %v324_v45  ;;  %836 = vmatmul.mubr.f32.vlgmr.msra.gmra.mxu0 %v324_v45 }
 0x39e   :  { %v413_v47 = vpop.f32.mrf.mxu1  ;;  %v505_v48 = vpop.f32.mrf.mxu0 }
 0x39f   :  { %v414_v50 = vadd.f32 %v573_v0, %v413_v47  ;;  %v506_v51 = vadd.f32 %v574_v46, %v505_v48 }
 0x3a0   :  { %v802_v52 = vpop.f32.mrf.mxu1  ;;  %v837_v53 = vpop.f32.mrf.mxu0 }
 0x3a1   :  { %559 = vst [vmem:[%s1036_s3] sm:$0xff] %v414_v50  ;;  %v515_v54 = vsub.f32 %v575_v49, %v506_v51 }
 0x3a3   :  { %v519_v55 = vand.u32 2147483647, %v515_v54  ;;  %v516_v3 = vmax.f32 %v515_v54, 0.0  ;;  %vm517_vm2 = vcmp.ne.f32.partialorder %v515_v54, %v515_v54 }
 0x3a5   :  { %v520_v56 = vsub.f32 0.0, %v519_v55 }
 0x3a7   :  { %v521_v57 = vmul.f32 1.442695, %v520_v56 }
 0x3a9   :  { %855 = vpow2.f32 %v521_v57 }
 0x3b6   :  { %v856_v58 = vpop.eup %855 }
 0x3b7   :  { %v523_v59 = vadd.f32 1.0, %v856_v58  ;;  %v526_v60 = vmul.f32 -0.5, %v856_v58  ;;  %v529_v62 = vand.u32 2147483647, %v856_v58 }
 0x3b9   :  { %857 = vlog2.f32 %v523_v59  ;;  %v527_v61 = vadd.f32 1.0, %v526_v60  ;;  %vm530_vm1 = vcmp.lt.f32.partialorder %v529_v62, 0.0004427343 }
 0x3bb   :  { %v528_v2 = vmul.f32 %v856_v58, %v527_v61 }
 0x3c6   :  { %v858_v63 = vpop.eup %857 }
 0x3c7   :  { %v525_v1 = vmul.f32 0.6931472, %v858_v63 }
 0x3c9   :  { %v531_v4 = vsel %vm530_vm1, %v528_v2, %v525_v1 }
 0x3ca   :  { %v532_v5 = vadd.f32 %v531_v4, %v516_v3 }
 0x3cc   :  { %v533_v7 = vsel %vm517_vm2, %v515_v54, %v532_v5 }
 0x3cd   :  { %v534_v8 = vsub.f32 %v575_v49, %v533_v7 }
 0x3cf   :  { %v539_v9 = vsub.f32 %v534_v8, %v576_v6 }
 0x3d1   :  { %v543_v10 = vand.u32 2147483647, %v539_v9  ;;  %v540_v21 = vmax.f32 %v539_v9, 0.0  ;;  %vm541_vm4 = vcmp.ne.f32.partialorder %v539_v9, %v539_v9 }
 0x3d3   :  { %v544_v11 = vsub.f32 0.0, %v543_v10 }
 0x3d5   :  { %v545_v12 = vmul.f32 1.442695, %v544_v11 }
 0x3d7   :  { %859 = vpow2.f32 %v545_v12 }
 0x3e4   :  { %v860_v13 = vpop.eup %859 }
 0x3e5   :  { %v547_v14 = vadd.f32 1.0, %v860_v13  ;;  %v550_v15 = vmul.f32 -0.5, %v860_v13  ;;  %v553_v17 = vand.u32 2147483647, %v860_v13 }
 0x3e7   :  { %861 = vlog2.f32 %v547_v14  ;;  %v551_v16 = vadd.f32 1.0, %v550_v15  ;;  %vm554_vm3 = vcmp.lt.f32.partialorder %v553_v17, 0.0004427343 }
 0x3e9   :  { %v552_v20 = vmul.f32 %v860_v13, %v551_v16 }
 0x3f4   :  { %v862_v18 = vpop.eup %861 }
 0x3f5   :  { %v549_v19 = vmul.f32 0.6931472, %v862_v18 }
 0x3f7   :  { %v555_v22 = vsel %vm554_vm3, %v552_v20, %v549_v19 }
 0x3f8   :  { %v556_v23 = vadd.f32 %v555_v22, %v540_v21 }
 0x3fa   :  { %v557_v24 = vsel %vm541_vm4, %v539_v9, %v556_v23 }
 0x3fb   :  { %v558_v25 = vadd.f32 %v576_v6, %v557_v24 }
 0x3fd   :  { %577 = vst [vmem:[%s1036_s3 + $0x8] sm:$0xff] %v558_v25 }
 0x3fe   :  { %566 = vsyncpa [#allocation3], 1 }

</bundles_post_ra>
